<compile_context>
chip_gen: v5e
topology: v5e:2x2
jax: 0.10.0
libtpu: 0.0.40
codegen_flags: <defaults>
</compile_context>

<pallas_src>
import functools
import math

import numpy as np
import jax
import jax.numpy as jnp
from jax import lax
from jax.experimental import pallas as pl
from jax.experimental.pallas import tpu as pltpu

LANES = 128
SUBLANES = 8
MAX_TILE_ROWS = 512  # 512x128 f32 tiles keep the onehot (~8 MiB) well under scoped VMEM.


def _ghmc_kernel(x_ref, t_ref, acc_ref, out_ref, stats_ref, *,
                 bins, momentum, tot, bp):
    """Grid axis 0 walks row-tiles; per-bin stats accumulate in VMEM scratch."""
    step = pl.program_id(0)
    last = pl.num_programs(0) - 1

    @pl.when(step == 0)
    def _init():
        stats_ref[...] = jnp.zeros_like(stats_ref)

    x = x_ref[...]                       # (tr, 128) f32
    t = t_ref[...]                       # (tr, 128) f32
    tr, lanes = x.shape

    # Shared transcendental: exp(-|x|) used by both sigmoid and the BCE log term.
    e = jnp.exp(-jnp.abs(x))
    inv1pe = 1.0 / (1.0 + e)
    sig = jnp.where(x >= 0.0, inv1pe, e * inv1pe)
    g = jnp.abs(sig - t)
    # Stable BCE with logits: max(x,0) - x*t + log(1 + exp(-|x|)).
    bce = jnp.maximum(x, 0.0) - x * t + jnp.log(1.0 + e)

    # Uniform-edge bin index; g >= 1+1e-6 (incl. the padded tail, t=2 sentinel) -> bin `bins`.
    raw = jnp.floor(g * jnp.float32(bins)).astype(jnp.int32)
    idx = jnp.minimum(raw, bins - 1)
    idx = jnp.where(g < jnp.float32(1.0 + 1e-6), idx, bins)

    # One-hot over bp bin columns; per-bin counts and per-bin BCE sums with one
    # batched MXU matmul: (tr, 2, 128) x (tr, bp, 128)^T_l -> (tr, 2, bp).
    j_iota = lax.broadcasted_iota(jnp.int32, (1, bp, 1), 1)
    onehot = (idx[:, None, :] == j_iota).astype(jnp.float32)          # (tr, bp, 128)
    m_iota = lax.broadcasted_iota(jnp.int32, (tr, 2, lanes), 1)
    lhs = jnp.where(m_iota == 0, 1.0, bce[:, None, :])                # row0: ones, row1: bce
    stats3 = lax.dot_general(lhs, onehot,
                             dimension_numbers=(((2,), (2,)), ((0,), (0,))),
                             preferred_element_type=jnp.float32)      # (tr, 2, bp)
    stats_ref[...] += jnp.sum(stats3, axis=0)                         # (2, bp)

    @pl.when(step == last)
    def _finalize():
        tot_f = jnp.float32(tot)
        counts = stats_ref[0:1, :]                                    # (1, bp)
        bce_bin = stats_ref[1:2, :]                                   # (1, bp)

        # Vectorized acc_sum / weight update across all bins at once.
        bin_lane = lax.broadcasted_iota(jnp.int32, (1, bp), 1)
        is_bin = bin_lane < bins
        cnt = jnp.where(is_bin, counts, 0.0)
        nonempty = cnt > 0.0
        acc_in = acc_ref[...][:, 0:bp]                                # (1, bp)
        if momentum > 0:
            acc_new = jnp.where(nonempty,
                                momentum * acc_in + (1.0 - momentum) * cnt,
                                acc_in)
            denom = acc_new
        else:
            acc_new = acc_in
            denom = cnt
        w = jnp.where(nonempty, tot_f / jnp.where(nonempty, denom, 1.0), 0.0)

        # loss = sum(w_norm * bce)/tot with w_norm = w / mean(w)  ==  sum_wb / sum_w
        # (if every bin is empty, all weights are 0 and the loss is 0).
        sum_w = jnp.sum(w * cnt, axis=1, keepdims=True)               # (1, 1)
        sum_wb = jnp.sum(w * bce_bin, axis=1, keepdims=True)          # (1, 1)
        loss = jnp.where(sum_w > 0.0,
                         sum_wb / jnp.maximum(sum_w, 1e-30),
                         jnp.zeros_like(sum_wb))

        # Single lane-dense (2, 128) output: [0,0]=loss, row 1 = new acc_sum.
        out_ref[...] = jnp.zeros_like(out_ref)
        out_ref[0:1, 0:1] = loss
        out_ref[1:2, 0:bp] = acc_new


class GHMCLossPallas:
    """Pallas TPU port of siamfc.losses.GHMCLoss (stateful acc_sum with momentum)."""

    def __init__(self, bins=30, momentum=0.5):
        self.bins = bins
        self.momentum = momentum
        # one-hot width: bins + 1 sentinel column, rounded up to a multiple of 8
        self.bp = ((bins + 1 + SUBLANES - 1) // SUBLANES) * SUBLANES
        assert self.bp <= LANES, "bins must fit within one 128-lane row"
        # acc_sum kept lane-dense: (1, 128) f32, lanes [0, bins) meaningful.
        self.acc_sum = jnp.zeros((1, LANES), jnp.float32)
        self._compiled = {}

    def __call__(self, input, target):
        key = tuple(input.shape)
        fn = self._compiled.get(key)
        if fn is None:
            fn = self._build(key)
            self._compiled[key] = fn
        loss, new_acc = fn(input, target, self.acc_sum)
        self.acc_sum = new_acc            # functional state threading (like the torch module)
        return loss

    def _build(self, shape):
        tot = int(math.prod(shape))
        chunk = SUBLANES * LANES
        rows = -(-tot // chunk) * SUBLANES            # multiple of 8
        if rows > MAX_TILE_ROWS:
            tr = MAX_TILE_ROWS
            rows = -(-rows // tr) * tr                # multiple of the tile height
        else:
            tr = rows
        padded = rows * LANES
        pad = padded - tot
        num_tiles = rows // tr
        bins, momentum, bp = self.bins, self.momentum, self.bp

        kernel = functools.partial(_ghmc_kernel, bins=bins, momentum=momentum,
                                   tot=tot, bp=bp)

        call = pl.pallas_call(
            kernel,
            out_shape=jax.ShapeDtypeStruct((2, LANES), jnp.float32),
            grid=(num_tiles,),
            in_specs=[
                pl.BlockSpec((tr, LANES), lambda i: (i, 0)),
                pl.BlockSpec((tr, LANES), lambda i: (i, 0)),
                pl.BlockSpec((1, LANES), lambda i: (0, 0)),
            ],
            out_specs=pl.BlockSpec((2, LANES), lambda i: (0, 0)),
            scratch_shapes=[pltpu.VMEM((2, bp), jnp.float32)],
            compiler_params=pltpu.CompilerParams(
                dimension_semantics=("arbitrary",)),
        )

        @jax.jit
        def fn(x, t, acc):
            xf = x.reshape(-1).astype(jnp.float32)
            tf = t.reshape(-1).astype(jnp.float32)
            if pad:
                # pad x with 0 and t with 2.0 => g = 1.5 lands in the sentinel bin,
                # so padded elements contribute nothing to the histogram or the loss.
                xf = jnp.pad(xf, (0, pad))
                tf = jnp.pad(tf, (0, pad), constant_values=2.0)
            out = call(xf.reshape(rows, LANES), tf.reshape(rows, LANES), acc)
            return out[0, 0], out[1:2, :]

        return fn


def _ghmc_reference(x, t, acc_sum, bins=30, momentum=0.5):
    """NumPy re-implementation of the PyTorch GHMCLoss.forward (the spec)."""
    edges = [i / bins for i in range(bins + 1)]
    edges[-1] += 1e-6
    xf = np.asarray(x, dtype=np.float32).reshape(-1)
    tf = np.asarray(t, dtype=np.float32).reshape(-1)
    g = np.abs(1.0 / (1.0 + np.exp(-xf)) - tf)
    tot = xf.size
    weights = np.zeros_like(xf)
    acc = np.asarray(acc_sum, dtype=np.float64).reshape(-1)[:bins].copy()
    n = 0
    for i in range(bins):
        inds = (g >= edges[i]) & (g < edges[i + 1])
        num = int(inds.sum())
        if num > 0:
            if momentum > 0:
                acc[i] = momentum * acc[i] + (1.0 - momentum) * num
                weights[inds] = tot / acc[i]
            else:
                weights[inds] = tot / num
            n += 1
    if n > 0:
        weights = weights / weights.mean()
    bce = np.maximum(xf, 0.0) - xf * tf + np.log1p(np.exp(-np.abs(xf)))
    return float(np.sum(weights * bce) / tot), acc


if __name__ == "__main__":
    B, C, H, W = 2, 4, 16, 16
    key = jax.random.PRNGKey(0)
    kx, kt = jax.random.split(key)
    x = jax.random.normal(kx, (B, C, H, W), dtype=jnp.float32) * 2.0
    target = jax.random.bernoulli(kt, 0.5, (B, C, H, W)).astype(jnp.float32)

    mod = GHMCLossPallas(bins=30, momentum=0.5)
    acc0 = mod.acc_sum

    loss1 = jax.block_until_ready(mod(x, target))
    ref1, acc1 = _ghmc_reference(np.asarray(x), np.asarray(target),
                                 np.asarray(acc0)[0], bins=30, momentum=0.5)
    assert abs(float(loss1) - ref1) <= 1e-3 * max(1.0, abs(ref1)), (float(loss1), ref1)

    # Second call exercises the stateful (momentum) acc_sum path through the cached jit fn.
    loss2 = jax.block_until_ready(mod(x, target))
    ref2, _ = _ghmc_reference(np.asarray(x), np.asarray(target),
                              acc1, bins=30, momentum=0.5)
    assert abs(float(loss2) - ref2) <= 1e-3 * max(1.0, abs(ref2)), (float(loss2), ref2)

    # TODO(synk): near-edge gradient values may fall in adjacent bins vs the f64-edge
    # reference due to f32 rounding of floor(g*bins); effect is << 1e-3 on the loss.
    print("KERNEL_OK")
</pallas_src>

<mosaic_0001>
module attributes {stable_mosaic.version = 11 : i64} {
  func.func @_ghmc_kernel(%arg0: i32, %arg1: memref<16x128xf32, #tpu.memory_space<vmem>>, %arg2: memref<16x128xf32, #tpu.memory_space<vmem>>, %arg3: memref<1x128xf32, #tpu.memory_space<vmem>>, %arg4: memref<2x128xf32, #tpu.memory_space<vmem>>, %arg5: memref<2x32xf32, #tpu.memory_space<vmem>>) attributes {dimension_semantics = [#tpu.dimension_semantics<arbitrary>], iteration_bounds = array<i64: 1>, scalar_prefetch = 0 : i64, scratch_operands = 1 : i64, tpu.core_type = #tpu.core_type<tc>, window_params = [{transform_indices = @transform_0, window_bounds = array<i64: 16, 128>}, {transform_indices = @transform_1, window_bounds = array<i64: 16, 128>}, {pipeline_mode = #tpu.pipeline_mode<synchronous>, transform_indices = @transform_2, window_bounds = array<i64: 1, 128>}, {pipeline_mode = #tpu.pipeline_mode<synchronous>, transform_indices = @transform_3, window_bounds = array<i64: 2, 128>}]} {
    %c0_i32 = arith.constant 0 : i32
    %0 = arith.cmpi eq, %arg0, %c0_i32 : i32
    %1 = arith.extui %0 : i1 to i32
    %c0_i32_0 = arith.constant 0 : i32
    %2 = arith.cmpi ne, %1, %c0_i32_0 : i32
    scf.if %2 {
      %cst_21 = arith.constant 0.000000e+00 : f32
      %60 = vector.broadcast %cst_21 : f32 to vector<2x32xf32>
      %c0_22 = arith.constant 0 : index
      %c0_23 = arith.constant 0 : index
      %61 = vector.load %arg5[%c0_22, %c0_23] : memref<2x32xf32, #tpu.memory_space<vmem>>, vector<2x32xf32>
      tpu.vector_store %arg5[%c0_22, %c0_23], %60 {strides = array<i32>} : memref<2x32xf32, #tpu.memory_space<vmem>>, vector<2x32xf32>,
    } else {
    }
    %c0 = arith.constant 0 : index
    %c0_1 = arith.constant 0 : index
    %3 = vector.load %arg1[%c0, %c0_1] : memref<16x128xf32, #tpu.memory_space<vmem>>, vector<16x128xf32>
    %c0_2 = arith.constant 0 : index
    %c0_3 = arith.constant 0 : index
    %4 = vector.load %arg2[%c0_2, %c0_3] : memref<16x128xf32, #tpu.memory_space<vmem>>, vector<16x128xf32>
    %5 = math.absf %3 : vector<16x128xf32>
    %cst = arith.constant 0.000000e+00 : f32
    %6 = vector.broadcast %cst : f32 to vector<16x128xf32>
    %7 = arith.subf %6, %5 : vector<16x128xf32>
    %8 = math.exp %7 : vector<16x128xf32>
    %cst_4 = arith.constant 1.000000e+00 : f32
    %9 = vector.broadcast %cst_4 : f32 to vector<16x128xf32>
    %10 = arith.addf %9, %8 : vector<16x128xf32>
    %cst_5 = arith.constant 1.000000e+00 : f32
    %11 = vector.broadcast %cst_5 : f32 to vector<16x128xf32>
    %12 = arith.divf %11, %10 : vector<16x128xf32>
    %cst_6 = arith.constant 0.000000e+00 : f32
    %13 = vector.broadcast %cst_6 : f32 to vector<16x128xf32>
    %14 = arith.cmpf oge, %3, %13 : vector<16x128xf32>
    %15 = arith.mulf %8, %12 : vector<16x128xf32>
    %16 = arith.select %14, %12, %15 : vector<16x128xi1>, vector<16x128xf32>
    %17 = arith.subf %16, %4 : vector<16x128xf32>
    %18 = math.absf %17 : vector<16x128xf32>
    %cst_7 = arith.constant 0.000000e+00 : f32
    %19 = vector.broadcast %cst_7 : f32 to vector<16x128xf32>
    %20 = arith.maximumf %3, %19 : vector<16x128xf32>
    %21 = arith.mulf %3, %4 : vector<16x128xf32>
    %22 = arith.subf %20, %21 : vector<16x128xf32>
    %cst_8 = arith.constant 1.000000e+00 : f32
    %23 = vector.broadcast %cst_8 : f32 to vector<16x128xf32>
    %24 = arith.addf %23, %8 : vector<16x128xf32>
    %25 = math.log %24 : vector<16x128xf32>
    %26 = arith.addf %22, %25 : vector<16x128xf32>
    %cst_9 = arith.constant 3.000000e+01 : f32
    %27 = vector.broadcast %cst_9 : f32 to vector<16x128xf32>
    %28 = arith.mulf %18, %27 : vector<16x128xf32>
    %29 = math.floor %28 : vector<16x128xf32>
    %30 = arith.fptosi %29 : vector<16x128xf32> to vector<16x128xi32>
    %c29_i32 = arith.constant 29 : i32
    %31 = vector.broadcast %c29_i32 : i32 to vector<16x128xi32>
    %32 = arith.minsi %30, %31 : vector<16x128xi32>
    %cst_10 = arith.constant 1.00000095 : f32
    %33 = vector.broadcast %cst_10 : f32 to vector<16x128xf32>
    %34 = arith.cmpf olt, %18, %33 : vector<16x128xf32>
    %c30_i32 = arith.constant 30 : i32
    %35 = vector.broadcast %c30_i32 : i32 to vector<16x128xi32>
    %36 = arith.select %34, %32, %35 : vector<16x128xi1>, vector<16x128xi32>
    %37 = tpu.iota {dimensions = array<i32: 1>} : vector<1x32x1xi32>
    %38 = vector.shape_cast %36 : vector<16x128xi32> to vector<16x1x128xi32>
    %39 = vector.broadcast %38 : vector<16x1x128xi32> to vector<16x32x128xi32>
    %40 = vector.broadcast %37 : vector<1x32x1xi32> to vector<16x32x128xi32>
    %41 = arith.cmpi eq, %39, %40 : vector<16x32x128xi32>
    %42 = arith.extui %41 : vector<16x32x128xi1> to vector<16x32x128xi32>
    %43 = arith.sitofp %42 : vector<16x32x128xi32> to vector<16x32x128xf32>
    %44 = tpu.iota {dimensions = array<i32: 1>} : vector<16x2x128xi32>
    %c0_i32_11 = arith.constant 0 : i32
    %45 = vector.broadcast %c0_i32_11 : i32 to vector<16x2x128xi32>
    %46 = arith.cmpi eq, %44, %45 : vector<16x2x128xi32>
    %47 = vector.shape_cast %26 : vector<16x128xf32> to vector<16x1x128xf32>
    %cst_12 = arith.constant 1.000000e+00 : f32
    %48 = vector.broadcast %cst_12 : f32 to vector<16x2x128xf32>
    %49 = vector.shape_cast %47 : vector<16x1x128xf32> to vector<16x1x128xf32>
    %50 = vector.broadcast %49 : vector<16x1x128xf32> to vector<16x2x128xf32>
    %51 = arith.select %46, %48, %50 : vector<16x2x128xi1>, vector<16x2x128xf32>
    %cst_13 = arith.constant dense<0.000000e+00> : vector<16x2x32xf32>
    %52 = tpu.matmul %51, %43, %cst_13 {dimension_numbers = #tpu.dot_dimension_numbers<[2], [2], [1], [1], [0, 0, 0, 1, 1, 1], [0], [0]>} : vector<16x2x128xf32>, vector<16x32x128xf32>, vector<16x2x32xf32> -> vector<16x2x32xf32>
    %c0_14 = arith.constant 0 : index
    %c0_15 = arith.constant 0 : index
    %53 = vector.load %arg5[%c0_14, %c0_15] : memref<2x32xf32, #tpu.memory_space<vmem>>, vector<2x32xf32>
    %cst_16 = arith.constant dense<0.000000e+00> : vector<2x32xf32>
    %54 = vector.multi_reduction <add>, %52, %cst_16 [0] : vector<16x2x32xf32> to vector<2x32xf32>
    %55 = arith.addf %53, %54 : vector<2x32xf32>
    %c0_17 = arith.constant 0 : index
    %c0_18 = arith.constant 0 : index
    %56 = vector.load %arg5[%c0_17, %c0_18] : memref<2x32xf32, #tpu.memory_space<vmem>>, vector<2x32xf32>
    tpu.vector_store %arg5[%c0_17, %c0_18], %55 {strides = array<i32>} : memref<2x32xf32, #tpu.memory_space<vmem>>, vector<2x32xf32>,
    %c0_i32_19 = arith.constant 0 : i32
    %57 = arith.cmpi eq, %arg0, %c0_i32_19 : i32
    %58 = arith.extui %57 : i1 to i32
    %c0_i32_20 = arith.constant 0 : i32
    %59 = arith.cmpi ne, %58, %c0_i32_20 : i32
    scf.if %59 {
      %c0_21 = arith.constant 0 : index
      %c0_22 = arith.constant 0 : index
      %60 = vector.load %arg5[%c0_21, %c0_22] : memref<2x32xf32, #tpu.memory_space<vmem>>, vector<1x32xf32>
      %c1 = arith.constant 1 : index
      %c0_23 = arith.constant 0 : index
      %61 = vector.load %arg5[%c1, %c0_23] : memref<2x32xf32, #tpu.memory_space<vmem>>, vector<1x32xf32>
      %62 = tpu.iota {dimensions = array<i32: 1>} : vector<1x32xi32>
      %c30_i32_24 = arith.constant 30 : i32
      %63 = vector.broadcast %c30_i32_24 : i32 to vector<1x32xi32>
      %64 = arith.cmpi slt, %62, %63 : vector<1x32xi32>
      %cst_25 = arith.constant 0.000000e+00 : f32
      %65 = vector.broadcast %cst_25 : f32 to vector<1x32xf32>
      %66 = arith.select %64, %60, %65 : vector<1x32xi1>, vector<1x32xf32>
      %cst_26 = arith.constant 0.000000e+00 : f32
      %67 = vector.broadcast %cst_26 : f32 to vector<1x32xf32>
      %68 = arith.cmpf ogt, %66, %67 : vector<1x32xf32>
      %c0_27 = arith.constant 0 : index
      %c0_28 = arith.constant 0 : index
      %69 = vector.load %arg3[%c0_27, %c0_28] : memref<1x128xf32, #tpu.memory_space<vmem>>, vector<1x128xf32>
      %70 = vector.extract_strided_slice %69 {offsets = [0, 0], sizes = [1, 32], strides = [1, 1]} : vector<1x128xf32> to vector<1x32xf32>
      %cst_29 = arith.constant 5.000000e-01 : f32
      %71 = vector.broadcast %cst_29 : f32 to vector<1x32xf32>
      %72 = arith.mulf %71, %70 : vector<1x32xf32>
      %cst_30 = arith.constant 5.000000e-01 : f32
      %73 = vector.broadcast %cst_30 : f32 to vector<1x32xf32>
      %74 = arith.mulf %73, %66 : vector<1x32xf32>
      %75 = arith.addf %72, %74 : vector<1x32xf32>
      %76 = arith.select %68, %75, %70 : vector<1x32xi1>, vector<1x32xf32>
      %cst_31 = arith.constant 1.000000e+00 : f32
      %77 = vector.broadcast %cst_31 : f32 to vector<1x32xf32>
      %78 = arith.select %68, %76, %77 : vector<1x32xi1>, vector<1x32xf32>
      %cst_32 = arith.constant 2.048000e+03 : f32
      %79 = vector.broadcast %cst_32 : f32 to vector<1x32xf32>
      %80 = arith.divf %79, %78 : vector<1x32xf32>
      %cst_33 = arith.constant 0.000000e+00 : f32
      %81 = vector.broadcast %cst_33 : f32 to vector<1x32xf32>
      %82 = arith.select %68, %80, %81 : vector<1x32xi1>, vector<1x32xf32>
      %83 = arith.mulf %82, %66 : vector<1x32xf32>
      %cst_34 = arith.constant dense<0.000000e+00> : vector<1xf32>
      %84 = vector.multi_reduction <add>, %83, %cst_34 [1] : vector<1x32xf32> to vector<1xf32>
      %85 = vector.shape_cast %84 : vector<1xf32> to vector<1x1xf32>
      %86 = arith.mulf %82, %61 : vector<1x32xf32>
      %cst_35 = arith.constant dense<0.000000e+00> : vector<1xf32>
      %87 = vector.multi_reduction <add>, %86, %cst_35 [1] : vector<1x32xf32> to vector<1xf32>
      %88 = vector.shape_cast %87 : vector<1xf32> to vector<1x1xf32>
      %cst_36 = arith.constant 0.000000e+00 : f32
      %89 = vector.broadcast %cst_36 : f32 to vector<1x1xf32>
      %90 = arith.cmpf ogt, %85, %89 : vector<1x1xf32>
      %cst_37 = arith.constant 1.000000e-30 : f32
      %91 = vector.broadcast %cst_37 : f32 to vector<1x1xf32>
      %92 = arith.maximumf %85, %91 : vector<1x1xf32>
      %93 = arith.divf %88, %92 : vector<1x1xf32>
      %cst_38 = arith.constant 0.000000e+00 : f32
      %94 = vector.broadcast %cst_38 : f32 to vector<1x1xf32>
      %95 = arith.select %90, %93, %94 : vector<1x1xi1>, vector<1x1xf32>
      %cst_39 = arith.constant 0.000000e+00 : f32
      %96 = vector.broadcast %cst_39 : f32 to vector<2x128xf32>
      %c0_40 = arith.constant 0 : index
      %c0_41 = arith.constant 0 : index
      %97 = vector.load %arg4[%c0_40, %c0_41] : memref<2x128xf32, #tpu.memory_space<vmem>>, vector<2x128xf32>
      tpu.vector_store %arg4[%c0_40, %c0_41], %96 {strides = array<i32>} : memref<2x128xf32, #tpu.memory_space<vmem>>, vector<2x128xf32>,
      %c0_42 = arith.constant 0 : index
      %c0_43 = arith.constant 0 : index
      %98 = vector.load %arg4[%c0_42, %c0_43] : memref<2x128xf32, #tpu.memory_space<vmem>>, vector<1x1xf32>
      tpu.vector_store %arg4[%c0_42, %c0_43], %95 {strides = array<i32>} : memref<2x128xf32, #tpu.memory_space<vmem>>, vector<1x1xf32>,
      %c1_44 = arith.constant 1 : index
      %c0_45 = arith.constant 0 : index
      %99 = vector.load %arg4[%c1_44, %c0_45] : memref<2x128xf32, #tpu.memory_space<vmem>>, vector<1x32xf32>
      tpu.vector_store %arg4[%c1_44, %c0_45], %76 {strides = array<i32>} : memref<2x128xf32, #tpu.memory_space<vmem>>, vector<1x32xf32>,
    } else {
    }
    return
  }
  func.func @transform_0(%arg0: i32) -> (i32, i32) {
    %c0_i32 = arith.constant 0 : i32
    %c0_i32_0 = arith.constant 0 : i32
    return %arg0, %c0_i32 : i32, i32
  }
  func.func @transform_1(%arg0: i32) -> (i32, i32) {
    %c0_i32 = arith.constant 0 : i32
    %c0_i32_0 = arith.constant 0 : i32
    return %arg0, %c0_i32 : i32, i32
  }
  func.func @transform_2(%arg0: i32) -> (i32, i32) {
    %c0_i32 = arith.constant 0 : i32
    %c0_i32_0 = arith.constant 0 : i32
    %c0_i32_1 = arith.constant 0 : i32
    return %c0_i32, %c0_i32_0 : i32, i32
  }
  func.func @transform_3(%arg0: i32) -> (i32, i32) {
    %c0_i32 = arith.constant 0 : i32
    %c0_i32_0 = arith.constant 0 : i32
    %c0_i32_1 = arith.constant 0 : i32
    return %c0_i32, %c0_i32_0 : i32, i32
  }
}

</mosaic_0001>

<bundles_post_ra>
// kernel: fn.1
= control target key start
LH: loop header
LB: loop body
LE: loop exit
PB: predicated region body
PF: predicated region fallthrough
CT: control target
= control target key end

     0   :  { %v100_v40 = vlaneseq  ;;  %v964_v63 = vmov 1.0   ;;  %s1346_s0 = inlined_call_operand.vmem [shape: f32[16,128], index: 0, kind: input, shape index: {}]   ;;  %s1347_s1 = inlined_call_operand.vmem [shape: f32[16,128], index: 1, kind: input, shape index: {}]   ;;  %s1348_s3 = inlined_call_operand.vmem [shape: f32[2,128], index: 3, kind: output, shape index: {}]   ;;  %s1349_s2 = inlined_call_operand.vmem [shape: f32[1,128], index: 2, kind: input, shape index: {}]  }
   0x1   :  { %v989_v0 = vld [vmem:[%s1346_s0] sm:$0xff]  ;;  %v994_v1 = vld [vmem:[%s1346_s0 + $0x8] sm:$0xff] }
   0x2   :  { %v24_v2 = vand.u32 2147483647, %v989_v0  ;;  %v25_v3 = vand.u32 2147483647, %v994_v1  ;;  %vm64_vm8 = vcmp.ge.f32.partialorder %v989_v0, 0.0  ;;  %v22_v31 = vld [vmem:[%s1347_s1] sm:$0xff] }
   0x3   :  { %vm65_vm9 = vcmp.ge.f32.partialorder %v994_v1, 0.0  ;;  %v1013_v37 = vld [vmem:[%s1347_s1 + $0x8] sm:$0xff]  ;;  %v1017_v44 = vshrl.u32 %v100_v40, 7  ;;  %v74_v47 = vmax.f32 %v989_v0, 0.0  ;;  %v76_v48 = vmul.f32 %v22_v31, %v989_v0 }
   0x4   :  { %v26_v4 = vsub.f32 0.0, %v24_v2  ;;  %v27_v5 = vsub.f32 0.0, %v25_v3 }
   0x5   :  { %v1024_v51 = vadd.s32 24, %v1017_v44  ;;  %v1027_v53 = vadd.s32 16, %v1017_v44  ;;  %v78_v59 = vsub.f32 %v74_v47, %v76_v48  ;;  %v1038_v3 = vadd.s32 8, %v1017_v44 }
   0x6   :  { %v28_v6 = vmul.f32 1.442695, %v26_v4  ;;  %v30_v7 = vmul.f32 1.442695, %v27_v5 }
   0x8   :  { %948 = vpow2.f32 %v28_v6 }
   0x9   :  { %950 = vpow2.f32 %v30_v7 }
   0xe   :  { %v949_v8 = vpop.eup %948 }
   0xf   :  { %v951_v9 = vpop.eup %950  ;;  %v32_v10 = vadd.f32 1.0, %v949_v8 }
  0x10   :  { %v998_v11 = vadd.f32 1.0, %v951_v9 }
  0x11   :  { %952 = vrcp.f32 %v32_v10  ;;  %vm39_vm0 = vweird.f32 %v32_v10  ;;  %v45_v15 = vand.u32 2147483648, %v32_v10  ;;  %v43_v18 = vand.u32 2147483647, %v32_v10 }
  0x12   :  { %954 = vrcp.f32 %v998_v11  ;;  %v60_v19 = vand.u32 2147483648, %v998_v11  ;;  %vm54_vm2 = vweird.f32 %v998_v11  ;;  %v58_v21 = vand.u32 2147483647, %v998_v11 }
  0x13   :  { %v46_v23 = vor.u32 1.1754944e-38, %v45_v15  ;;  %vm44_vm5 = vcmp.eq.f32.partialorder %v43_v18, 8.507059e+37  ;;  %956 = vlog2.f32 %v32_v10 }
  0x14   :  { %v61_v26 = vor.u32 1.1754944e-38, %v60_v19  ;;  %vm59_vm7 = vcmp.eq.f32.partialorder %v58_v21, 8.507059e+37  ;;  %958 = vlog2.f32 %v998_v11 }
  0x17   :  { %v953_v12 = vpop.eup %952 }
  0x18   :  { %v955_v13 = vpop.eup %954  ;;  %v35_v14 = vmul.f32 %v953_v12, %v32_v10  ;;  %vm40_vm1 = vweird.f32 %v953_v12 }
  0x19   :  { %v50_v16 = vmul.f32 %v955_v13, %v998_v11  ;;  %vm55_vm3 = vweird.f32 %v955_v13  ;;  %vm41_vm4 = vmor %vm39_vm0, %vm40_vm1  ;;  %v957_v49 = vpop.eup %956 }
  0x1a   :  { %v36_v17 = vsub.f32 1.0, %v35_v14  ;;  %vm56_vm6 = vmor %vm54_vm2, %vm55_vm3  ;;  %v81_v60 = vmul.f32 0.6931472, %v957_v49 }
  0x1b   :  { %v51_v20 = vsub.f32 1.0, %v50_v16 }
  0x1c   :  { %v37_v22 = vmul.f32 %v953_v12, %v36_v17  ;;  %v1040_v4 = vadd.f32 %v81_v60, %v78_v59 }
  0x1d   :  { %v52_v24 = vmul.f32 %v955_v13, %v51_v20 }
  0x1e   :  { %v38_v25 = vadd.f32 %v953_v12, %v37_v22  ;;  %v344_v16 = vperm.slane %v1040_v4, 0  ;;  %v332_v17 = vrot.slane %v1040_v4, 3 }
  0x1f   :  { %v53_v27 = vadd.f32 %v955_v13, %v52_v24 }
  0x20   :  { %v42_v28 = vsel %vm41_vm4, %v953_v12, %v38_v25  ;;  %v331_v12 = vrot.slane %v1040_v4, 2 }
  0x21   :  { %v47_v29 = vsel %vm44_vm5, %v46_v23, %v42_v28  ;;  %v57_v30 = vsel %vm56_vm6, %v955_v13, %v53_v27  ;;  %v330_v13 = vrot.slane %v1040_v4, 1  ;;  %v347_v23 = vperm.slane %v332_v17, 0 }
  0x22   :  { %v62_v32 = vsel %vm59_vm7, %v61_v26, %v57_v30  ;;  %v66_v33 = vmul.f32 %v949_v8, %v47_v29  ;;  %v346_v19 = vperm.slane %v331_v12, 0  ;;  %v75_v30 = vmax.f32 %v994_v1, 0.0 }
  0x23   :  { %v67_v34 = vmul.f32 %v951_v9, %v62_v32  ;;  %v345_v21 = vperm.slane %v330_v13, 0 }
  0x24   :  { %v68_v35 = vsel %vm64_vm8, %v47_v29, %v66_v33  ;;  %v333_v29 = vrot.slane %v1040_v4, 4 }
  0x25   :  { %v70_v36 = vsub.f32 %v68_v35, %v22_v31  ;;  %v69_v38 = vsel %vm65_vm9, %v62_v32, %v67_v34  ;;  %v77_v31 = vmul.f32 %v1013_v37, %v994_v1  ;;  %v959_v34 = vpop.eup %958  ;;  %v335_v35 = vrot.slane %v1040_v4, 6 }
  0x26   :  { %v71_v41 = vsub.f32 %v69_v38, %v1013_v37  ;;  %v334_v1 = vrot.slane %v1040_v4, 5  ;;  %v348_v38 = vperm.slane %v333_v29, 0 }
  0x27   :  { %v72_v39 = vand.u32 2147483647, %v70_v36 }
  0x28   :  { %v1019_v45 = vand.u32 2147483647, %v71_v41  ;;  %v79_v41 = vsub.f32 %v75_v30, %v77_v31 }
  0x29   :  { %v86_v42 = vmul.f32 30.0, %v72_v39  ;;  %vm96_vm10 = vcmp.lt.f32.partialorder %v72_v39, 1.000001  ;;  %v336_v39 = vrot.slane %v1040_v4, 7 }
  0x2a   :  { %v87_v54 = vmul.f32 30.0, %v1019_v45 }
  0x2b   :  { %v88_v43 = vfloor.f32 %v86_v42  ;;  %v83_v42 = vmul.f32 0.6931472, %v959_v34  ;;  %v351_v48 = vperm.slane %v336_v39, 0 }
  0x2c   :  { %v89_v2 = vfloor.f32 %v87_v54 }
  0x2d   :  { %v943_v46 = vcvt.f32.s32 %v88_v43  ;;  %v1185_v49 = vadd.f32 %v83_v42, %v79_v41 }
  0x2e   :  { %v945_v8 = vcvt.f32.s32 %v89_v2 }
  0x2f   :  { %vm92_vm11 = vcmp.lt.s32.totalorder %v943_v46, 29  ;;  %v338_v59 = vrot.slane %v1185_v49, 2  ;;  %v339_v2 = vrot.slane %v1185_v49, 3  ;;  %v352_v4 = vperm.slane %v1185_v49, 0 }
  0x30   :  { %v93_v50 = vsel %vm92_vm11, %v943_v46, 29  ;;  %vm94_vm8 = vcmp.lt.s32.totalorder %v945_v8, 29  ;;  %v349_v46 = vperm.slane %v334_v1, 0 }
  0x31   :  { %v98_v52 = vsel %vm96_vm10, %v93_v50, 30  ;;  %vm97_vm10 = vcmp.lt.f32.partialorder %v1019_v45, 1.000001  ;;  %v95_v20 = vsel %vm94_vm8, %v945_v8, 29  ;;  %v350_v45 = vperm.slane %v335_v35, 0 }
  0x32   :  { %v119_v55 = vperm.slane %v98_v52, 0  ;;  %v105_v56 = vrot.slane %v98_v52, 1  ;;  %v106_v57 = vrot.slane %v98_v52, 2  ;;  %v107_v58 = vrot.slane %v98_v52, 3 }
  0x33   :  { %v108_v5 = vrot.slane %v98_v52, 4  ;;  %v109_v6 = vrot.slane %v98_v52, 5  ;;  %v110_v7 = vrot.slane %v98_v52, 6  ;;  %v111_v10 = vrot.slane %v98_v52, 7 }
  0x34   :  { %vm138_vm12 = vcmp.eq.s32.totalorder %v119_v55, %v1024_v51  ;;  %v120_v61 = vperm.slane %v105_v56, 0  ;;  %v121_v62 = vperm.slane %v106_v57, 0  ;;  %v1032_v0 = vperm.slane %v107_v58, 0 }
  0x35   :  { %878 = vmatpush.xpose.msk.msra.mxu0 %vm138_vm12, %v964_v63  ;;  %vm137_vm15 = vcmp.eq.s32.totalorder %v119_v55, %v1027_v53  ;;  %vm136_vm4 = vcmp.eq.s32.totalorder %v119_v55, %v1038_v3  ;;  %v1055_v9 = vperm.slane %v108_v5, 0  ;;  %v1065_v14 = vperm.slane %v109_v6, 0 }
  0x36   :  { %vm142_vm13 = vcmp.eq.s32.totalorder %v120_v61, %v1024_v51  ;;  %vm146_vm14 = vcmp.eq.s32.totalorder %v121_v62, %v1024_v51  ;;  %vm150_vm0 = vcmp.eq.s32.totalorder %v1032_v0, %v1024_v51  ;;  %vm141_vm1 = vcmp.eq.s32.totalorder %v120_v61, %v1027_v53 }
  0x37   :  { %882 = vmatpush.xpose.msk.msra.mxu1 %vm142_vm13, %v964_v63  ;;  %886 = vmatpush.xpose.msk.msra.mxu2 %vm146_vm14, %v964_v63  ;;  %vm145_vm2 = vcmp.eq.s32.totalorder %v121_v62, %v1027_v53  ;;  %vm149_vm3 = vcmp.eq.s32.totalorder %v1032_v0, %v1027_v53  ;;  %vm140_vm5 = vcmp.eq.s32.totalorder %v120_v61, %v1038_v3  ;;  %v1067_v15 = vperm.slane %v110_v7, 0 }
  0x38   :  { %890 = vmatpush.xpose.msk.msra.mxu3 %vm150_vm0, %v964_v63  ;;  %vm144_vm6 = vcmp.eq.s32.totalorder %v121_v62, %v1038_v3  ;;  %vm148_vm7 = vcmp.eq.s32.totalorder %v1032_v0, %v1038_v3  ;;  %vm135_vm9 = vcmp.eq.s32.totalorder %v119_v55, %v1017_v44  ;;  %vm154_vm11 = vcmp.eq.s32.totalorder %v1055_v9, %v1024_v51 }
  0x39   :  { %879 = vmatpush.xpose.msk.msra.mxu0 %vm137_vm15, %v964_v63  ;;  %v1077_v18 = vperm.slane %v111_v10, 0  ;;  %vm327_vm12 = vcmp.eq.s32.totalorder %v1017_v44, 0  ;;  %vm139_vm13 = vcmp.eq.s32.totalorder %v120_v61, %v1017_v44  ;;  %vm143_vm14 = vcmp.eq.s32.totalorder %v121_v62, %v1017_v44 }
  0x3a   :  { %vm158_vm15 = vcmp.eq.s32.totalorder %v1065_v14, %v1024_v51  ;;  %vm162_vm0 = vcmp.eq.s32.totalorder %v1067_v15, %v1024_v51  ;;  %v376_v22 = vsel %vm327_vm12, 1.0, %v344_v16  ;;  %v1102_v24 = vsel %vm97_vm10, %v95_v20, 30 }
  0x3b   :  { %883 = vmatpush.xpose.msk.msra.mxu1 %vm141_vm1, %v964_v63  ;;  %887 = vmatpush.xpose.msk.msra.mxu2 %vm145_vm2, %v964_v63  ;;  %vm147_vm1 = vcmp.eq.s32.totalorder %v1032_v0, %v1017_v44  ;;  %vm153_vm2 = vcmp.eq.s32.totalorder %v1055_v9, %v1027_v53  ;;  %v378_v11 = vsel %vm327_vm12, 1.0, %v346_v19  ;;  %v377_v25 = vsel %vm327_vm12, 1.0, %v345_v21 }
  0x3c   :  { %891 = vmatpush.xpose.msk.msra.mxu3 %vm149_vm3, %v964_v63  ;;  %vm166_vm3 = vcmp.eq.s32.totalorder %v1077_v18, %v1024_v51  ;;  %v379_v26 = vsel %vm327_vm12, 1.0, %v347_v23  ;;  %v112_v27 = vrot.slane %v1102_v24, 1  ;;  %v113_v28 = vrot.slane %v1102_v24, 2 }
  0x3d   :  { %880 = vmatpush.xpose.msk.msra.mxu0 %vm136_vm4, %v964_v63  ;;  %vm157_vm4 = vcmp.eq.s32.totalorder %v1065_v14, %v1027_v53  ;;  %v1132_v32 = vperm.slane %v1102_v24, 0  ;;  %v114_v33 = vrot.slane %v1102_v24, 3  ;;  %vm156_vm8 = vcmp.eq.s32.totalorder %v1065_v14, %v1038_v3 }
  0x3e   :  { %v1149_v36 = vperm.slane %v112_v27, 0  ;;  %v1151_v37 = vperm.slane %v113_v28, 0  ;;  %vm151_vm10 = vcmp.eq.s32.totalorder %v1055_v9, %v1017_v44  ;;  %v380_v47 = vsel %vm327_vm12, 1.0, %v348_v38 }
  0x3f   :  { %884 = vmatpush.xpose.msk.msra.mxu1 %vm140_vm5, %v964_v63  ;;  %888 = vmatpush.xpose.msk.msra.mxu2 %vm144_vm6, %v964_v63  ;;  %vm161_vm5 = vcmp.eq.s32.totalorder %v1067_v15, %v1027_v53  ;;  %vm152_vm6 = vcmp.eq.s32.totalorder %v1055_v9, %v1038_v3  ;;  %v1162_v43 = vperm.slane %v114_v33, 0  ;;  %v382_v50 = vsel %vm327_vm12, 1.0, %v350_v45 }
  0x40   :  { %892 = vmatpush.xpose.msk.msra.mxu3 %vm148_vm7, %v964_v63  ;;  %vm165_vm7 = vcmp.eq.s32.totalorder %v1077_v18, %v1027_v53  ;;  %v381_v52 = vsel %vm327_vm12, 1.0, %v349_v46  ;;  %v115_v54 = vrot.slane %v1102_v24, 4  ;;  %v383_v55 = vsel %vm327_vm12, 1.0, %v351_v48 }
  0x41   :  { %881 = vmatpush.xpose.msk.msra.mxu0 %vm135_vm9, %v964_v63  ;;  %vm160_vm9 = vcmp.eq.s32.totalorder %v1067_v15, %v1038_v3  ;;  %v116_v56 = vrot.slane %v1102_v24, 5  ;;  %v117_v57 = vrot.slane %v1102_v24, 6  ;;  %v118_v60 = vrot.slane %v1102_v24, 7 }
  0x42   :  { %v1211_v58 = vperm.slane %v115_v54, 0  ;;  %v337_v61 = vrot.slane %v1185_v49, 1  ;;  %v354_v5 = vperm.slane %v338_v59, 0  ;;  %v355_v8 = vperm.slane %v339_v2, 0 }
  0x43   :  { %885 = vmatpush.xpose.msk.msra.mxu1 %vm139_vm13, %v964_v63  ;;  %889 = vmatpush.xpose.msk.msra.mxu2 %vm143_vm14, %v964_v63  ;;  %vm170_vm13 = vcmp.eq.s32.totalorder %v1132_v32, %v1024_v51  ;;  %vm155_vm14 = vcmp.eq.s32.totalorder %v1065_v14, %v1017_v44  ;;  %v1222_v62 = vperm.slane %v116_v56, 0  ;;  %v1224_v0 = vperm.slane %v117_v57, 0 }
  0x44   :  { %893 = vmatpush.xpose.msk.msra.mxu3 %vm147_vm1, %v964_v63  ;;  %408 = vmatmul.f32.vlgmr.msra.gmra.mxu0 %v376_v22  ;;  %vm178_vm1 = vcmp.eq.s32.totalorder %v1151_v37, %v1024_v51  ;;  %v134_v6 = vperm.slane %v118_v60, 0  ;;  %v353_v7 = vperm.slane %v337_v61, 0  ;;  %v384_v9 = vsel %vm327_vm12, 1.0, %v352_v4 }
  0x45   :  { %894 = vmatpush.xpose.msk.msrb.mxu0 %vm154_vm11, %v964_v63  ;;  %vm164_vm11 = vcmp.eq.s32.totalorder %v1077_v18, %v1038_v3  ;;  %v386_v10 = vsel %vm327_vm12, 1.0, %v354_v5  ;;  %v387_v13 = vsel %vm327_vm12, 1.0, %v355_v8  ;;  %v341_v14 = vrot.slane %v1185_v49, 5 }
  0x46   :  { %448 = vmatmul.f32.vlgmr.msra.gmra.mxu2 %v378_v11  ;;  %428 = vmatmul.f32.vlgmr.msra.gmra.mxu1 %v377_v25  ;;  %v385_v12 = vsel %vm327_vm12, 1.0, %v353_v7 }
  0x47   :  { %898 = vmatpush.xpose.msk.msrb.mxu1 %vm158_vm15, %v964_v63  ;;  %902 = vmatpush.xpose.msk.msrb.mxu2 %vm162_vm0, %v964_v63  ;;  %vm159_vm15 = vcmp.eq.s32.totalorder %v1067_v15, %v1017_v44  ;;  %vm174_vm0 = vcmp.eq.s32.totalorder %v1149_v36, %v1024_v51  ;;  %v342_v15 = vrot.slane %v1185_v49, 6  ;;  %v357_v17 = vperm.slane %v341_v14, 0 }
  0x48   :  { %906 = vmatpush.xpose.msk.msrb.mxu3 %vm166_vm3, %v964_v63  ;;  %vm169_vm3 = vcmp.eq.s32.totalorder %v1132_v32, %v1027_v53 }
  0x49   :  { %895 = vmatpush.xpose.msk.msrb.mxu0 %vm153_vm2, %v964_v63  ;;  %468 = vmatmul.f32.vlgmr.msra.gmra.mxu3 %v379_v26  ;;  %vm163_vm2 = vcmp.eq.s32.totalorder %v1077_v18, %v1017_v44  ;;  %v358_v18 = vperm.slane %v342_v15, 0 }
  0x4b   :  { %899 = vmatpush.xpose.msk.msrb.mxu1 %vm157_vm4, %v964_v63  ;;  %903 = vmatpush.xpose.msk.msrb.mxu2 %vm161_vm5, %v964_v63  ;;  %vm182_vm4 = vcmp.eq.s32.totalorder %v1162_v43, %v1024_v51  ;;  %vm173_vm5 = vcmp.eq.s32.totalorder %v1149_v36, %v1027_v53  ;;  %v390_v21 = vsel %vm327_vm12, 1.0, %v358_v18 }
  0x4c   :  { %907 = vmatpush.xpose.msk.msrb.mxu3 %vm165_vm7, %v964_v63  ;;  %vm168_vm7 = vcmp.eq.s32.totalorder %v1132_v32, %v1038_v3 }
  0x4d   :  { %896 = vmatpush.xpose.msk.msrb.mxu0 %vm152_vm6, %v964_v63  ;;  %vm177_vm6 = vcmp.eq.s32.totalorder %v1151_v37, %v1027_v53 }
  0x4f   :  { %900 = vmatpush.xpose.msk.msrb.mxu1 %vm156_vm8, %v964_v63  ;;  %904 = vmatpush.xpose.msk.msrb.mxu2 %vm160_vm9, %v964_v63  ;;  %vm181_vm8 = vcmp.eq.s32.totalorder %v1162_v43, %v1027_v53  ;;  %vm172_vm9 = vcmp.eq.s32.totalorder %v1149_v36, %v1038_v3 }
  0x50   :  { %908 = vmatpush.xpose.msk.msrb.mxu3 %vm164_vm11, %v964_v63  ;;  %vm167_vm11 = vcmp.eq.s32.totalorder %v1132_v32, %v1017_v44  ;;  %v965_v32 = vmov 0.0  }
  0x51   :  { %897 = vmatpush.xpose.msk.msrb.mxu0 %vm151_vm10, %v964_v63  ;;  %vm176_vm10 = vcmp.eq.s32.totalorder %v1151_v37, %v1038_v3  ;;  %806 = vst [vmem:[%s1348_s3] sm:$0x3] %v965_v32 }
  0x53   :  { %901 = vmatpush.xpose.msk.msrb.mxu1 %vm155_vm14, %v964_v63  ;;  %905 = vmatpush.xpose.msk.msrb.mxu2 %vm159_vm15, %v964_v63  ;;  %vm186_vm14 = vcmp.eq.s32.totalorder %v1211_v58, %v1024_v51  ;;  %vm171_vm15 = vcmp.eq.s32.totalorder %v1149_v36, %v1017_v44 }
  0x54   :  { %909 = vmatpush.xpose.msk.msrb.mxu3 %vm163_vm2, %v964_v63  ;;  %488 = vmatmul.f32.vlgmr.msrb.gmra.mxu0 %v380_v47  ;;  %vm194_vm2 = vcmp.eq.s32.totalorder %v1224_v0, %v1024_v51 }
  0x55   :  { %910 = vmatpush.xpose.msk.msra.mxu0 %vm170_vm13, %v964_v63  ;;  %vm180_vm13 = vcmp.eq.s32.totalorder %v1162_v43, %v1038_v3 }
  0x56   :  { %528 = vmatmul.f32.vlgmr.msrb.gmra.mxu2 %v382_v50  ;;  %508 = vmatmul.f32.vlgmr.msrb.gmra.mxu1 %v381_v52 }
  0x57   :  { %914 = vmatpush.xpose.msk.msra.mxu1 %vm174_vm0, %v964_v63  ;;  %918 = vmatpush.xpose.msk.msra.mxu2 %vm178_vm1, %v964_v63  ;;  %vm175_vm0 = vcmp.eq.s32.totalorder %v1151_v37, %v1017_v44  ;;  %vm190_vm1 = vcmp.eq.s32.totalorder %v1222_v62, %v1024_v51 }
  0x58   :  { %922 = vmatpush.xpose.msk.msra.mxu3 %vm182_vm4, %v964_v63  ;;  %vm185_vm4 = vcmp.eq.s32.totalorder %v1211_v58, %v1027_v53 }
  0x59   :  { %911 = vmatpush.xpose.msk.msra.mxu0 %vm169_vm3, %v964_v63  ;;  %548 = vmatmul.f32.vlgmr.msrb.gmra.mxu3 %v383_v55  ;;  %vm179_vm3 = vcmp.eq.s32.totalorder %v1162_v43, %v1017_v44 }
  0x5b   :  { %915 = vmatpush.xpose.msk.msra.mxu1 %vm173_vm5, %v964_v63  ;;  %919 = vmatpush.xpose.msk.msra.mxu2 %vm177_vm6, %v964_v63  ;;  %vm198_vm5 = vcmp.eq.s32.totalorder %v134_v6, %v1024_v51  ;;  %vm189_vm6 = vcmp.eq.s32.totalorder %v1222_v62, %v1027_v53  ;;  %v340_v51 = vrot.slane %v1185_v49, 4 }
  0x5c   :  { %923 = vmatpush.xpose.msk.msra.mxu3 %vm181_vm8, %v964_v63  ;;  %vm184_vm8 = vcmp.eq.s32.totalorder %v1211_v58, %v1038_v3 }
  0x5d   :  { %912 = vmatpush.xpose.msk.msra.mxu0 %vm168_vm7, %v964_v63  ;;  %vm193_vm7 = vcmp.eq.s32.totalorder %v1224_v0, %v1027_v53  ;;  %v356_v16 = vperm.slane %v340_v51, 0  ;;  %v757_v51 = vld [vmem:[%s1349_s2] sm:$0x1] }
  0x5e   :  { %v758_v15 = vmul.f32 0.5, %v757_v51 }
  0x5f   :  { %916 = vmatpush.xpose.msk.msra.mxu1 %vm172_vm9, %v964_v63  ;;  %920 = vmatpush.xpose.msk.msra.mxu2 %vm176_vm10, %v964_v63  ;;  %vm197_vm9 = vcmp.eq.s32.totalorder %v134_v6, %v1027_v53  ;;  %vm188_vm10 = vcmp.eq.s32.totalorder %v1222_v62, %v1038_v3  ;;  %v343_v53 = vrot.slane %v1185_v49, 7  ;;  %v388_v19 = vsel %vm327_vm12, 1.0, %v356_v16 }
  0x60   :  { %924 = vmatpush.xpose.msk.msra.mxu3 %vm180_vm13, %v964_v63  ;;  %vm183_vm13 = vcmp.eq.s32.totalorder %v1211_v58, %v1017_v44 }
  0x61   :  { %913 = vmatpush.xpose.msk.msra.mxu0 %vm167_vm11, %v964_v63  ;;  %vm192_vm11 = vcmp.eq.s32.totalorder %v1224_v0, %v1038_v3  ;;  %v359_v20 = vperm.slane %v343_v53, 0 }
  0x63   :  { %917 = vmatpush.xpose.msk.msra.mxu1 %vm171_vm15, %v964_v63  ;;  %921 = vmatpush.xpose.msk.msra.mxu2 %vm175_vm0, %v964_v63  ;;  %vm187_vm15 = vcmp.eq.s32.totalorder %v1222_v62, %v1017_v44  ;;  %vm191_vm0 = vcmp.eq.s32.totalorder %v1224_v0, %v1017_v44  ;;  %v391_v22 = vsel %vm327_vm12, 1.0, %v359_v20 }
  0x64   :  { %925 = vmatpush.xpose.msk.msra.mxu3 %vm179_vm3, %v964_v63  ;;  %568 = vmatmul.f32.vlgmr.msra.gmra.mxu0 %v384_v9  ;;  %vm780_vm3 = vcmask 253952  }
  0x65   :  { %926 = vmatpush.xpose.msk.msrb.mxu0 %vm186_vm14, %v964_v63  ;;  %vm196_vm14 = vcmp.eq.s32.totalorder %v134_v6, %v1038_v3  ;;  %v389_v3 = vsel %vm327_vm12, 1.0, %v357_v17 }
  0x66   :  { %608 = vmatmul.f32.vlgmr.msra.gmra.mxu2 %v386_v10  ;;  %588 = vmatmul.f32.vlgmr.msra.gmra.mxu1 %v385_v12 }
  0x67   :  { %930 = vmatpush.xpose.msk.msrb.mxu1 %vm190_vm1, %v964_v63  ;;  %934 = vmatpush.xpose.msk.msrb.mxu2 %vm194_vm2, %v964_v63  ;;  %vm195_vm1 = vcmp.eq.s32.totalorder %v134_v6, %v1017_v44  ;;  %vm18_vm2 = vcmask 254976  }
  0x68   :  { %938 = vmatpush.xpose.msk.msrb.mxu3 %vm198_vm5, %v964_v63  ;;  %19 = vst.msk [vmem:[#allocation2] sm:$0x3] %vm18_vm2, %v965_v32 }
  0x69   :  { %927 = vmatpush.xpose.msk.msrb.mxu0 %vm185_vm4, %v964_v63  ;;  %628 = vmatmul.f32.vlgmr.msra.gmra.mxu3 %v387_v13  ;;  %v753_v13 = vand.u32 127, %v100_v40 }
  0x6b   :  { %931 = vmatpush.xpose.msk.msrb.mxu1 %vm189_vm6, %v964_v63  ;;  %935 = vmatpush.xpose.msk.msrb.mxu2 %vm193_vm7, %v964_v63  ;;  %vm754_vm12 = vcmp.lt.s32.totalorder %v753_v13, 30 }
  0x6c   :  { %939 = vmatpush.xpose.msk.msrb.mxu3 %vm197_vm9, %v964_v63 }
  0x6d   :  { %928 = vmatpush.xpose.msk.msrb.mxu0 %vm184_vm8, %v964_v63 }
  0x6f   :  { %932 = vmatpush.xpose.msk.msrb.mxu1 %vm188_vm10, %v964_v63  ;;  %936 = vmatpush.xpose.msk.msrb.mxu2 %vm192_vm11, %v964_v63  ;;  %v712_v8 = vld [vmem:[#allocation2] sm:$0x3] }
  0x70   :  { %940 = vmatpush.xpose.msk.msrb.mxu3 %vm196_vm14, %v964_v63  ;;  %vm807_vm14 = vcmask 0  }
  0x71   :  { %929 = vmatpush.xpose.msk.msrb.mxu0 %vm183_vm13, %v964_v63 }
  0x73   :  { %933 = vmatpush.xpose.msk.msrb.mxu1 %vm187_vm15, %v964_v63  ;;  %937 = vmatpush.xpose.msk.msrb.mxu2 %vm191_vm0, %v964_v63 }
  0x74   :  { %648 = vmatmul.f32.vlgmr.msrb.gmra.mxu0 %v388_v19  ;;  %941 = vmatpush.xpose.msk.msrb.mxu3 %vm195_vm1, %v964_v63 }
  0x76   :  { %668 = vmatmul.f32.vlgmr.msrb.gmra.mxu1 %v389_v3  ;;  %688 = vmatmul.f32.vlgmr.msrb.gmra.mxu2 %v390_v21 }
  0x77   :  { %708 = vmatmul.f32.vlgmr.msrb.gmra.mxu3 %v391_v22 }
  0xc1   :  { %v409_v23 = vpop.f32.mrf.mxu0 }
  0xc2   :  { %v714_v11 = vsel %vm18_vm2, %v409_v23, 0.0 }
  0xc3   :  { %v429_v24 = vpop.f32.mrf.mxu1 }
  0xc4   :  { %v715_v25 = vsel %vm18_vm2, %v429_v24, 0.0 }
  0xc5   :  { %v716_v26 = vadd.f32 %v715_v25, %v714_v11 }
  0xc9   :  { %v449_v27 = vpop.f32.mrf.mxu2 }
  0xca   :  { %v717_v28 = vsel %vm18_vm2, %v449_v27, 0.0 }
  0xcb   :  { %v718_v29 = vadd.f32 %v717_v28, %v716_v26 }
  0xcc   :  { %v469_v30 = vpop.f32.mrf.mxu3 }
  0xcd   :  { %v719_v63 = vsel %vm18_vm2, %v469_v30, 0.0 }
  0xce   :  { %v720_v31 = vadd.f32 %v719_v63, %v718_v29 }
  0xd1   :  { %v489_v44 = vpop.f32.mrf.mxu0 }
  0xd2   :  { %v721_v33 = vsel %vm18_vm2, %v489_v44, 0.0 }
  0xd3   :  { %v722_v34 = vadd.f32 %v721_v33, %v720_v31  ;;  %v509_v35 = vpop.f32.mrf.mxu1 }
  0xd4   :  { %v723_v1 = vsel %vm18_vm2, %v509_v35, 0.0 }
  0xd5   :  { %v724_v36 = vadd.f32 %v723_v1, %v722_v34 }
  0xd9   :  { %v529_v37 = vpop.f32.mrf.mxu2 }
  0xda   :  { %v725_v38 = vsel %vm18_vm2, %v529_v37, 0.0 }
  0xdb   :  { %v726_v39 = vadd.f32 %v725_v38, %v724_v36 }
  0xdc   :  { %v549_v41 = vpop.f32.mrf.mxu3 }
  0xdd   :  { %v727_v42 = vsel %vm18_vm2, %v549_v41, 0.0 }
  0xde   :  { %v728_v43 = vadd.f32 %v727_v42, %v726_v39 }
  0xe1   :  { %v569_v45 = vpop.f32.mrf.mxu0 }
  0xe2   :  { %v729_v46 = vsel %vm18_vm2, %v569_v45, 0.0 }
  0xe3   :  { %v730_v47 = vadd.f32 %v729_v46, %v728_v43  ;;  %v589_v48 = vpop.f32.mrf.mxu1 }
  0xe4   :  { %v731_v49 = vsel %vm18_vm2, %v589_v48, 0.0 }
  0xe5   :  { %v732_v50 = vadd.f32 %v731_v49, %v730_v47 }
  0xe9   :  { %v609_v52 = vpop.f32.mrf.mxu2 }
  0xea   :  { %v733_v54 = vsel %vm18_vm2, %v609_v52, 0.0 }
  0xeb   :  { %v734_v55 = vadd.f32 %v733_v54, %v732_v50 }
  0xec   :  { %v629_v56 = vpop.f32.mrf.mxu3 }
  0xed   :  { %v735_v57 = vsel %vm18_vm2, %v629_v56, 0.0 }
  0xee   :  { %v736_v59 = vadd.f32 %v735_v57, %v734_v55 }
  0xf1   :  { %v649_v58 = vpop.f32.mrf.mxu0 }
  0xf2   :  { %v737_v60 = vsel %vm18_vm2, %v649_v58, 0.0 }
  0xf3   :  { %v669_v61 = vpop.f32.mrf.mxu1  ;;  %v738_v62 = vadd.f32 %v737_v60, %v736_v59 }
  0xf4   :  { %v739_v0 = vsel %vm18_vm2, %v669_v61, 0.0 }
  0xf5   :  { %v740_v2 = vadd.f32 %v739_v0, %v738_v62 }
  0xf9   :  { %v689_v4 = vpop.f32.mrf.mxu2 }
  0xfa   :  { %v741_v5 = vsel %vm18_vm2, %v689_v4, 0.0  ;;  %v709_v7 = vpop.f32.mrf.mxu3 }
  0xfb   :  { %v742_v6 = vadd.f32 %v741_v5, %v740_v2  ;;  %v743_v9 = vsel %vm18_vm2, %v709_v7, 0.0 }
  0xfd   :  { %v744_v10 = vadd.f32 %v743_v9, %v742_v6 }
  0xff   :  { %v745_v12 = vadd.f32 %v744_v10, %v712_v8 }
 0x101   :  { %746 = vst.msk [vmem:[#allocation2] sm:$0x3] %vm18_vm2, %v745_v12 }
 0x108   :  { %v750_v14 = vld [vmem:[#allocation2] sm:$0x1]  ;;  %v751_v63 = vld [vmem:[#allocation2 + $0x1] sm:$0x1] }
 0x109   :  { %v755_v16 = vsel %vm754_vm12, %v750_v14, 0.0 }
 0x10a   :  { %v759_v53 = vmul.f32 0.5, %v755_v16  ;;  %vm756_vm4 = vcmp.gt.f32.partialorder %v755_v16, 0.0 }
 0x10c   :  { %v760_v17 = vadd.f32 %v759_v53, %v758_v15 }
 0x10e   :  { %v762_v18 = vsel %vm756_vm4, %v760_v17, 1.0  ;;  %v761_v19 = vsel %vm756_vm4, %v760_v17, %v757_v51 }
 0x10f   :  { %960 = vrcp.f32 %v762_v18  ;;  %809 = vst.msk [vmem:[%s1348_s3 + $0x1] sm:$0x1] %vm780_vm3, %v761_v19  ;;  %v774_v21 = vand.u32 2147483648, %v762_v18  ;;  %v772_v23 = vand.u32 2147483647, %v762_v18  ;;  %vm768_vm6 = vweird.f32 %v762_v18 }
 0x111   :  { %v775_v11 = vor.u32 1.1754944e-38, %v774_v21  ;;  %vm773_vm8 = vcmp.eq.f32.partialorder %v772_v23, 8.507059e+37 }
 0x115   :  { %v961_v40 = vpop.eup %960 }
 0x116   :  { %v764_v20 = vmul.f32 %v961_v40, %v762_v18  ;;  %vm769_vm5 = vweird.f32 %v961_v40 }
 0x117   :  { %vm770_vm7 = vmor %vm768_vm6, %vm769_vm5 }
 0x118   :  { %v765_v3 = vsub.f32 1.0, %v764_v20 }
 0x11a   :  { %v766_v22 = vmul.f32 %v961_v40, %v765_v3 }
 0x11c   :  { %v767_v24 = vadd.f32 %v961_v40, %v766_v22 }
 0x11e   :  { %v771_v25 = vsel %vm770_vm7, %v961_v40, %v767_v24 }
 0x11f   :  { %v776_v26 = vsel %vm773_vm8, %v775_v11, %v771_v25 }
 0x120   :  { %v777_v27 = vmul.f32 2048.0, %v776_v26 }
 0x122   :  { %v778_v28 = vsel %vm756_vm4, %v777_v27, 0.0 }
 0x123   :  { %v779_v29 = vmul.f32 %v778_v28, %v755_v16  ;;  %v784_v31 = vmul.f32 %v778_v28, %v751_v63 }
 0x125   :  { %v781_v30 = vsel %vm780_vm3, %v779_v29, 0.0  ;;  %v785_v44 = vsel %vm780_vm3, %v784_v31, 0.0 }
 0x126   :  { %782 = vadd.xlane.f32.xlu0 %v781_v30 }
 0x12e   :  { %786 = vadd.xlane.f32.xlu0 %v785_v44 }
 0x199   :  { %v783_v32 = vpop.xlane.xlu0 %782 }
 0x19a   :  { %v789_v33 = vmax.f32 %v783_v32, 1e-30  ;;  %vm788_vm15 = vcmp.gt.f32.partialorder %v783_v32, 0.0 }
 0x19c   :  { %962 = vrcp.f32 %v789_v33  ;;  %v801_v36 = vand.u32 2147483648, %v789_v33  ;;  %v799_v38 = vand.u32 2147483647, %v789_v33  ;;  %vm795_vm10 = vweird.f32 %v789_v33 }
 0x19e   :  { %v802_v41 = vor.u32 1.1754944e-38, %v801_v36  ;;  %vm800_vm13 = vcmp.eq.f32.partialorder %v799_v38, 8.507059e+37 }
 0x1a1   :  { %v787_v45 = vpop.xlane.xlu0 %786 }
 0x1a2   :  { %v963_v34 = vpop.eup %962 }
 0x1a3   :  { %v791_v35 = vmul.f32 %v963_v34, %v789_v33  ;;  %vm796_vm9 = vweird.f32 %v963_v34 }
 0x1a4   :  { %vm797_vm11 = vmor %vm795_vm10, %vm796_vm9 }
 0x1a5   :  { %v792_v1 = vsub.f32 1.0, %v791_v35 }
 0x1a7   :  { %v793_v37 = vmul.f32 %v963_v34, %v792_v1 }
 0x1a9   :  { %v794_v39 = vadd.f32 %v963_v34, %v793_v37 }
 0x1ab   :  { %v798_v42 = vsel %vm797_vm11, %v963_v34, %v794_v39 }
 0x1ac   :  { %v803_v43 = vsel %vm800_vm13, %v802_v41, %v798_v42 }
 0x1ad   :  { %v804_v46 = vmul.f32 %v803_v43, %v787_v45 }
 0x1af   :  { %v805_v47 = vsel %vm788_vm15, %v804_v46, 0.0 }
 0x1b0   :  { %808 = vst.msk [vmem:[%s1348_s3] sm:$0x1] %vm807_vm14, %v805_v47 }

</bundles_post_ra>
